<compile_context>
chip_gen: v7x
topology: tpu7x:2x2x1
jax: 0.10.0
libtpu: 0.0.40
codegen_flags: <defaults>
</compile_context>

<pallas_src>
import jax
import jax.numpy as jnp
from jax.experimental import pallas as pl
from jax.experimental.pallas import tpu as pltpu


def _round_up(x, m):
    return ((x + m - 1) // m) * m


def critic_mlp_kernel(x_ref,
                      w1_ref, b1_ref,
                      w2_ref, b2_ref,
                      w3_ref, b3_ref,
                      w4_ref, b4_ref,
                      out_ref):
    """Fused 4-layer MLP on one batch tile: (Linear+ReLU) x3 -> Linear."""
    x = x_ref[...].astype(jnp.bfloat16)

    h1 = jnp.dot(x, w1_ref[...], preferred_element_type=jnp.float32)
    h1 = jnp.maximum(h1 + b1_ref[...], 0.0)

    h2 = jnp.dot(h1.astype(jnp.bfloat16), w2_ref[...],
                 preferred_element_type=jnp.float32)
    h2 = jnp.maximum(h2 + b2_ref[...], 0.0)

    h3 = jnp.dot(h2.astype(jnp.bfloat16), w3_ref[...],
                 preferred_element_type=jnp.float32)
    h3 = jnp.maximum(h3 + b3_ref[...], 0.0)

    # Final 128 -> 1 layer: VPU elementwise mul + XLU lane reduction
    # (avoids an N=1 MXU matmul that would waste 255/256 output lanes).
    w4 = w4_ref[...].astype(jnp.float32)                 # (1, 128)
    v = jnp.sum(h3 * w4, axis=-1, keepdims=True) + b4_ref[...]

    out_ref[...] = v.astype(out_ref.dtype)


def critic_forward(state, params, *, block_batch=256):
    """state: [B, state_dim] f32 -> value: [B, 1] f32."""
    (w1, b1), (w2, b2), (w3, b3), (w4, b4) = params
    B, S = state.shape

    # Pick the batch tile so that padded work is minimal:
    #   - multiple of 8 (sublane granularity)
    #   - at most `block_batch` (256 fills the 256-row MXU on v6e/v7x and keeps
    #     f32 activations at ~1.8 MB/tile, far under the default VMEM budget)
    #   - number of tiles is the minimum needed, tile size balanced across them
    #     (e.g. B=300 -> 2 tiles of 152 rows, not pad-to-512).
    B8 = _round_up(B, 8)
    n_tiles = pl.cdiv(B8, block_batch)
    TB = _round_up(pl.cdiv(B8, n_tiles), 8)
    B_pad = n_tiles * TB
    if B_pad != B:
        state = jnp.pad(state, ((0, B_pad - B), (0, 0)))
    grid = (n_tiles,)

    # Weights / biases: full-array blocks with a constant block index ->
    # DMA'd once, VMEM-resident across every batch tile.
    def resident(a):
        nd = a.ndim
        return pl.BlockSpec(a.shape, lambda i, _nd=nd: (0,) * _nd)

    flops = 2 * B_pad * (S * 512 + 512 * 256 + 256 * 128 + 128 * 1)
    bytes_accessed = (sum(int(a.size) * a.dtype.itemsize
                          for a in (w1, b1, w2, b2, w3, b3, w4, b4))
                      + B_pad * (S + 1) * 4)

    out = pl.pallas_call(
        critic_mlp_kernel,
        out_shape=jax.ShapeDtypeStruct((B_pad, 1), jnp.float32),
        grid=grid,
        in_specs=[pl.BlockSpec((TB, S), lambda i: (i, 0)),
                  resident(w1), resident(b1),
                  resident(w2), resident(b2),
                  resident(w3), resident(b3),
                  resident(w4), resident(b4)],
        out_specs=pl.BlockSpec((TB, 1), lambda i: (i, 0)),
        compiler_params=pltpu.CompilerParams(
            dimension_semantics=("parallel",)),
        cost_estimate=pl.CostEstimate(
            flops=flops, transcendentals=0, bytes_accessed=bytes_accessed),
    )(state, w1, b1, w2, b2, w3, b3, w4, b4)
    return out[:B]


def init_params(key, state_dim):
    """Mirror layer_init: W ~ N(0, 0.1), b = 0.  Weights stored in bf16."""
    dims = [state_dim, 512, 256, 128, 1]
    params = []
    for i in range(4):
        key, sub = jax.random.split(key)
        fan_in, fan_out = dims[i], dims[i + 1]
        # PyTorch stores W as [out, in]; layers 1-3 are stored transposed
        # [in, out] for x @ W; the final layer keeps (1, 128) for the VPU path.
        w = 0.1 * jax.random.normal(sub, (fan_in, fan_out), dtype=jnp.float32)
        if i == 3:
            w = w.T                      # (1, 128)
        b = jnp.zeros((1, fan_out), dtype=jnp.float32)
        params.append((w.astype(jnp.bfloat16), b))
    return params


def critic_ref(state, params):
    """Pure-JAX f32 reference (same bf16-stored weights, f32 math)."""
    (w1, b1), (w2, b2), (w3, b3), (w4, b4) = params
    x = jnp.maximum(state @ w1.astype(jnp.float32) + b1, 0.0)
    x = jnp.maximum(x @ w2.astype(jnp.float32) + b2, 0.0)
    x = jnp.maximum(x @ w3.astype(jnp.float32) + b3, 0.0)
    return x @ w4.astype(jnp.float32).T + b4


if __name__ == "__main__":
    key = jax.random.PRNGKey(0)
    batch, state_dim, action_dim = 8, 32, 4  # action_dim unused in forward

    k_params, k_state, k_big = jax.random.split(key, 3)
    params = init_params(k_params, state_dim)

    # Small batch (single tile, grid=(1,)).
    state = jax.random.normal(k_state, (batch, state_dim), dtype=jnp.float32)
    value = jax.block_until_ready(critic_forward(state, params))
    expected = critic_ref(state, params)
    assert value.shape == (batch, 1), value.shape
    assert jnp.allclose(value, expected, atol=5e-2, rtol=5e-2), (
        "small-batch mismatch vs reference")

    # Larger, non-tile-aligned batch: exercises minimal padding + multi-tile grid.
    big_B = 300
    state_big = jax.random.normal(k_big, (big_B, state_dim), dtype=jnp.float32)
    value_big = jax.block_until_ready(critic_forward(state_big, params))
    expected_big = critic_ref(state_big, params)
    assert value_big.shape == (big_B, 1), value_big.shape
    assert jnp.allclose(value_big, expected_big, atol=5e-2, rtol=5e-2), (
        "large-batch mismatch vs reference")

    print("KERNEL_OK")
</pallas_src>

<mosaic_0001>
module attributes {stable_mosaic.version = 11 : i64} {
  func.func @critic_mlp_kernel(%arg0: i32, %arg1: memref<8x32xf32, #tpu.memory_space<vmem>>, %arg2: memref<32x512xbf16, #tpu.memory_space<vmem>>, %arg3: memref<1x512xf32, #tpu.memory_space<vmem>>, %arg4: memref<512x256xbf16, #tpu.memory_space<vmem>>, %arg5: memref<1x256xf32, #tpu.memory_space<vmem>>, %arg6: memref<256x128xbf16, #tpu.memory_space<vmem>>, %arg7: memref<1x128xf32, #tpu.memory_space<vmem>>, %arg8: memref<1x128xbf16, #tpu.memory_space<vmem>>, %arg9: memref<1x1xf32, #tpu.memory_space<vmem>>, %arg10: memref<8x1xf32, #tpu.memory_space<vmem>>) attributes {dimension_semantics = [#tpu.dimension_semantics<parallel>], iteration_bounds = array<i64: 1>, scalar_prefetch = 0 : i64, scratch_operands = 0 : i64, tpu.core_type = #tpu.core_type<tc>, window_params = [{transform_indices = @transform_0, window_bounds = array<i64: 8, 32>}, {pipeline_mode = #tpu.pipeline_mode<synchronous>, transform_indices = @transform_1, window_bounds = array<i64: 32, 512>}, {pipeline_mode = #tpu.pipeline_mode<synchronous>, transform_indices = @transform_2, window_bounds = array<i64: 1, 512>}, {pipeline_mode = #tpu.pipeline_mode<synchronous>, transform_indices = @transform_3, window_bounds = array<i64: 512, 256>}, {pipeline_mode = #tpu.pipeline_mode<synchronous>, transform_indices = @transform_4, window_bounds = array<i64: 1, 256>}, {pipeline_mode = #tpu.pipeline_mode<synchronous>, transform_indices = @transform_5, window_bounds = array<i64: 256, 128>}, {pipeline_mode = #tpu.pipeline_mode<synchronous>, transform_indices = @transform_6, window_bounds = array<i64: 1, 128>}, {pipeline_mode = #tpu.pipeline_mode<synchronous>, transform_indices = @transform_7, window_bounds = array<i64: 1, 128>}, {pipeline_mode = #tpu.pipeline_mode<synchronous>, transform_indices = @transform_8, window_bounds = array<i64: 1, 1>}, {transform_indices = @transform_9, window_bounds = array<i64: 8, 1>}]} {
    %c0 = arith.constant 0 : index
    %c0_0 = arith.constant 0 : index
    %0 = vector.load %arg1[%c0, %c0_0] : memref<8x32xf32, #tpu.memory_space<vmem>>, vector<8x32xf32>
    %1 = arith.truncf %0 : vector<8x32xf32> to vector<8x32xbf16>
    %c0_1 = arith.constant 0 : index
    %c0_2 = arith.constant 0 : index
    %2 = vector.load %arg2[%c0_1, %c0_2] : memref<32x512xbf16, #tpu.memory_space<vmem>>, vector<32x512xbf16>
    %cst = arith.constant dense<0.000000e+00> : vector<8x512xf32>
    %3 = tpu.matmul %1, %2, %cst {dimension_numbers = #tpu.dot_dimension_numbers<[1], [0], [0], [1], [0, 0, 1, 1], [], []>} : vector<8x32xbf16>, vector<32x512xbf16>, vector<8x512xf32> -> vector<8x512xf32>
    %c0_3 = arith.constant 0 : index
    %c0_4 = arith.constant 0 : index
    %4 = vector.load %arg3[%c0_3, %c0_4] : memref<1x512xf32, #tpu.memory_space<vmem>>, vector<1x512xf32>
    %5 = vector.broadcast %4 : vector<1x512xf32> to vector<8x512xf32>
    %6 = arith.addf %3, %5 : vector<8x512xf32>
    %cst_5 = arith.constant 0.000000e+00 : f32
    %7 = vector.broadcast %cst_5 : f32 to vector<8x512xf32>
    %8 = arith.maximumf %6, %7 : vector<8x512xf32>
    %9 = arith.truncf %8 : vector<8x512xf32> to vector<8x512xbf16>
    %c0_6 = arith.constant 0 : index
    %c0_7 = arith.constant 0 : index
    %10 = vector.load %arg4[%c0_6, %c0_7] : memref<512x256xbf16, #tpu.memory_space<vmem>>, vector<512x256xbf16>
    %cst_8 = arith.constant dense<0.000000e+00> : vector<8x256xf32>
    %11 = tpu.matmul %9, %10, %cst_8 {dimension_numbers = #tpu.dot_dimension_numbers<[1], [0], [0], [1], [0, 0, 1, 1], [], []>} : vector<8x512xbf16>, vector<512x256xbf16>, vector<8x256xf32> -> vector<8x256xf32>
    %c0_9 = arith.constant 0 : index
    %c0_10 = arith.constant 0 : index
    %12 = vector.load %arg5[%c0_9, %c0_10] : memref<1x256xf32, #tpu.memory_space<vmem>>, vector<1x256xf32>
    %13 = vector.broadcast %12 : vector<1x256xf32> to vector<8x256xf32>
    %14 = arith.addf %11, %13 : vector<8x256xf32>
    %cst_11 = arith.constant 0.000000e+00 : f32
    %15 = vector.broadcast %cst_11 : f32 to vector<8x256xf32>
    %16 = arith.maximumf %14, %15 : vector<8x256xf32>
    %17 = arith.truncf %16 : vector<8x256xf32> to vector<8x256xbf16>
    %c0_12 = arith.constant 0 : index
    %c0_13 = arith.constant 0 : index
    %18 = vector.load %arg6[%c0_12, %c0_13] : memref<256x128xbf16, #tpu.memory_space<vmem>>, vector<256x128xbf16>
    %cst_14 = arith.constant dense<0.000000e+00> : vector<8x128xf32>
    %19 = tpu.matmul %17, %18, %cst_14 {dimension_numbers = #tpu.dot_dimension_numbers<[1], [0], [0], [1], [0, 0, 1, 1], [], []>} : vector<8x256xbf16>, vector<256x128xbf16>, vector<8x128xf32> -> vector<8x128xf32>
    %c0_15 = arith.constant 0 : index
    %c0_16 = arith.constant 0 : index
    %20 = vector.load %arg7[%c0_15, %c0_16] : memref<1x128xf32, #tpu.memory_space<vmem>>, vector<1x128xf32>
    %21 = vector.broadcast %20 : vector<1x128xf32> to vector<8x128xf32>
    %22 = arith.addf %19, %21 : vector<8x128xf32>
    %cst_17 = arith.constant 0.000000e+00 : f32
    %23 = vector.broadcast %cst_17 : f32 to vector<8x128xf32>
    %24 = arith.maximumf %22, %23 : vector<8x128xf32>
    %c0_18 = arith.constant 0 : index
    %c0_19 = arith.constant 0 : index
    %25 = vector.load %arg8[%c0_18, %c0_19] : memref<1x128xbf16, #tpu.memory_space<vmem>>, vector<1x128xbf16>
    %26 = arith.extf %25 : vector<1x128xbf16> to vector<1x128xf32>
    %27 = vector.broadcast %26 : vector<1x128xf32> to vector<8x128xf32>
    %28 = arith.mulf %24, %27 : vector<8x128xf32>
    %cst_20 = arith.constant dense<0.000000e+00> : vector<8xf32>
    %29 = vector.multi_reduction <add>, %28, %cst_20 [1] : vector<8x128xf32> to vector<8xf32>
    %30 = vector.shape_cast %29 : vector<8xf32> to vector<8x1xf32>
    %c0_21 = arith.constant 0 : index
    %c0_22 = arith.constant 0 : index
    %31 = vector.load %arg9[%c0_21, %c0_22] : memref<1x1xf32, #tpu.memory_space<vmem>>, vector<1x1xf32>
    %32 = vector.broadcast %31 : vector<1x1xf32> to vector<8x1xf32>
    %33 = arith.addf %30, %32 : vector<8x1xf32>
    %c0_23 = arith.constant 0 : index
    %c0_24 = arith.constant 0 : index
    %34 = vector.load %arg10[%c0_23, %c0_24] : memref<8x1xf32, #tpu.memory_space<vmem>>, vector<8x1xf32>
    tpu.vector_store %arg10[%c0_23, %c0_24], %33 {strides = array<i32>} : memref<8x1xf32, #tpu.memory_space<vmem>>, vector<8x1xf32>,
    return
  }
  func.func @transform_0(%arg0: i32) -> (i32, i32) {
    %c0_i32 = arith.constant 0 : i32
    %c0_i32_0 = arith.constant 0 : i32
    return %arg0, %c0_i32 : i32, i32
  }
  func.func @transform_1(%arg0: i32) -> (i32, i32) {
    %c0_i32 = arith.constant 0 : i32
    %c0_i32_0 = arith.constant 0 : i32
    %c0_i32_1 = arith.constant 0 : i32
    return %c0_i32, %c0_i32_0 : i32, i32
  }
  func.func @transform_2(%arg0: i32) -> (i32, i32) {
    %c0_i32 = arith.constant 0 : i32
    %c0_i32_0 = arith.constant 0 : i32
    %c0_i32_1 = arith.constant 0 : i32
    return %c0_i32, %c0_i32_0 : i32, i32
  }
  func.func @transform_3(%arg0: i32) -> (i32, i32) {
    %c0_i32 = arith.constant 0 : i32
    %c0_i32_0 = arith.constant 0 : i32
    %c0_i32_1 = arith.constant 0 : i32
    return %c0_i32, %c0_i32_0 : i32, i32
  }
  func.func @transform_4(%arg0: i32) -> (i32, i32) {
    %c0_i32 = arith.constant 0 : i32
    %c0_i32_0 = arith.constant 0 : i32
    %c0_i32_1 = arith.constant 0 : i32
    return %c0_i32, %c0_i32_0 : i32, i32
  }
  func.func @transform_5(%arg0: i32) -> (i32, i32) {
    %c0_i32 = arith.constant 0 : i32
    %c0_i32_0 = arith.constant 0 : i32
    %c0_i32_1 = arith.constant 0 : i32
    return %c0_i32, %c0_i32_0 : i32, i32
  }
  func.func @transform_6(%arg0: i32) -> (i32, i32) {
    %c0_i32 = arith.constant 0 : i32
    %c0_i32_0 = arith.constant 0 : i32
    %c0_i32_1 = arith.constant 0 : i32
    return %c0_i32, %c0_i32_0 : i32, i32
  }
  func.func @transform_7(%arg0: i32) -> (i32, i32) {
    %c0_i32 = arith.constant 0 : i32
    %c0_i32_0 = arith.constant 0 : i32
    %c0_i32_1 = arith.constant 0 : i32
    return %c0_i32, %c0_i32_0 : i32, i32
  }
  func.func @transform_8(%arg0: i32) -> (i32, i32) {
    %c0_i32 = arith.constant 0 : i32
    %c0_i32_0 = arith.constant 0 : i32
    %c0_i32_1 = arith.constant 0 : i32
    return %c0_i32, %c0_i32_0 : i32, i32
  }
  func.func @transform_9(%arg0: i32) -> (i32, i32) {
    %c0_i32 = arith.constant 0 : i32
    %c0_i32_0 = arith.constant 0 : i32
    return %arg0, %c0_i32 : i32, i32
  }
}

</mosaic_0001>

<bundles_post_ra>
// kernel: tpu_custom_call.1
= control target key start
LH: loop header
LB: loop body
LE: loop exit
PB: predicated region body
PF: predicated region fallthrough
CT: control target
= control target key end

     0   :  { %s1429_s0 = inlined_call_operand.hbm [shape: f32[8,32], index: 0, kind: input, shape index: {}]   ;;  %s1430_s1 = inlined_call_operand.hbm [shape: bf16[32,512], index: 1, kind: input, shape index: {}]   ;;  %s1431_s2 = inlined_call_operand.vmem [shape: f32[1,512], index: 2, kind: input, shape index: {}]   ;;  %s1432_s3 = inlined_call_operand.hbm [shape: bf16[512,256], index: 3, kind: input, shape index: {}]   ;;  %s1433_s4 = inlined_call_operand.vmem [shape: f32[1,256], index: 4, kind: input, shape index: {}]   ;;  %s1434_s5 = inlined_call_operand.hbm [shape: bf16[256,128], index: 5, kind: input, shape index: {}]   ;;  %s1435_s6 = inlined_call_operand.vmem [shape: f32[1,128], index: 6, kind: input, shape index: {}]   ;;  %s1436_s7 = inlined_call_operand.vmem [shape: bf16[1,128], index: 7, kind: input, shape index: {}]   ;;  %s1437_s8 = inlined_call_operand.<no memory space> [shape: f32[1,1], index: 8, kind: input, shape index: {}]   ;;  %s1438_s9 = inlined_call_operand.vmem [shape: f32[8,1], index: 9, kind: output, shape index: {}]  }
   0x1   :  { %v14_v0 = vstv %s1437_s8 }
   0x2   :  { %15 = vst [vmem:[#allocation2] sm:$0x1] %v14_v0 }
   0x3   :  { %16 = vsyncpa [#allocation4], 0 }
   0x4   :  { %17 = vsyncpa [#allocation6], 0 }
   0x5   :  { %18 = vsyncpa [#allocation9], 0  ;;  %s1285_s11 = smov [#allocation5]   ;;  %s1191_s15 = scalar_lea.hbm %s1430_s1, 1024 }
   0x6   :  { %s34_s12 = sshll.u32 %s1285_s11, 4  ;;  %p1192_p0 = scmp.ne.s32.totalorder %s1430_s1, %s1191_s15  ;;  %s35_s12 = int_to_ptr.vmem [resolvable:$true] %s34_s12 }
   0x7   :  { %p1195_p1 = scmp.lt.u32.totalorder %s1191_s15, %s1430_s1 }
   0x9   :  { %p1197_p2 = pnand %p1195_p1, %p1192_p0 }
   0xb   :  { %1200 = shalt.err (!%p1197_p2)
}
   0xc   :  { %s1201_s8 = scalar_lea.vmem %s35_s12, 1024  ;;  %p1206_p4 = scmp.lt.s32.totalorder %s35_s12, %s35_s12 }
   0xd   :  { %p1202_p3 = scmp.ne.s32.totalorder %s35_s12, %s1201_s8  ;;  %p1207_p5 = scmp.lt.s32.totalorder %s1201_s8, %s1201_s8 }
   0xf   :  { %p1208_p6 = por %p1207_p5, %p1206_p4 }
  0x11   :  { %p1209_p7 = pnand %p1208_p6, %p1202_p3 }
  0x13   :  { %1212 = shalt.err (!%p1209_p7)
}
  0x14   :  { %s1286_s20 = smov 256   ;;  %s1287_s21 = smov 16  }
  0x15   :  { %40 = dma.hbm_to_vmem [thread:$0]  %s1430_s1, 1024, %s35_s12, [#allocation6], %s1286_s20, %s1286_s20, %s1287_s21  }
  0x16   :  { %s1288_s24 = smov [#allocation3]   ;;  %s1289_s26 = smov [#allocation7]  }
  0x17   :  { %s25_s25 = sshll.u32 %s1288_s24, 4  ;;  %s48_s27 = sshll.u32 %s1289_s26, 4  ;;  %s26_s25 = int_to_ptr.vmem [resolvable:$true] %s25_s25  ;;  %s49_s27 = int_to_ptr.vmem [resolvable:$true] %s48_s27 }
  0x18   :  { %s1213_s30 = scalar_lea.hbm %s1429_s0, 128 }
  0x19   :  { %p1214_p8 = scmp.ne.s32.totalorder %s1429_s0, %s1213_s30  ;;  %p1217_p9 = scmp.lt.u32.totalorder %s1213_s30, %s1429_s0 }
  0x1b   :  { %p1219_p10 = pnand %p1217_p9, %p1214_p8 }
  0x1d   :  { %1222 = shalt.err (!%p1219_p10)
}
  0x1e   :  { %s1223_s1 = scalar_lea.vmem %s26_s25, 128  ;;  %p1228_p12 = scmp.lt.s32.totalorder %s26_s25, %s26_s25 }
  0x1f   :  { %p1224_p11 = scmp.ne.s32.totalorder %s26_s25, %s1223_s1  ;;  %p1229_p13 = scmp.lt.s32.totalorder %s1223_s1, %s1223_s1 }
  0x21   :  { %p1230_p0 = por %p1229_p13, %p1228_p12 }
  0x23   :  { %p1231_p1 = pnand %p1230_p0, %p1224_p11 }
  0x25   :  { %1234 = shalt.err (!%p1231_p1)
}
  0x26   :  { %28 = dma.hbm_to_vmem [thread:$0]  %s1429_s0, 128, %s26_s25, [#allocation4]  }
  0x27   :  { %s1235_s18 = scalar_lea.hbm %s1432_s3, 8192 }
  0x28   :  { %p1236_p2 = scmp.ne.s32.totalorder %s1432_s3, %s1235_s18  ;;  %p1239_p3 = scmp.lt.u32.totalorder %s1235_s18, %s1432_s3 }
  0x2a   :  { %p1241_p4 = pnand %p1239_p3, %p1236_p2 }
  0x2c   :  { %1244 = shalt.err (!%p1241_p4)
}
  0x2d   :  { %s1245_s22 = scalar_lea.vmem %s49_s27, 8192  ;;  %p1250_p6 = scmp.lt.s32.totalorder %s49_s27, %s49_s27 }
  0x2e   :  { %p1246_p5 = scmp.ne.s32.totalorder %s49_s27, %s1245_s22  ;;  %p1251_p7 = scmp.lt.s32.totalorder %s1245_s22, %s1245_s22 }
  0x30   :  { %p1252_p8 = por %p1251_p7, %p1250_p6 }
  0x32   :  { %p1253_p9 = pnand %p1252_p8, %p1246_p5 }
  0x34   :  { %1256 = shalt.err (!%p1253_p9)
}
  0x35   :  { %s1290_s0 = smov 128   ;;  %s1291_s23 = smov 8  }
  0x36   :  { %54 = dma.hbm_to_vmem [thread:$0]  %s1432_s3, 8192, %s49_s27, [#allocation6], %s1290_s0, %s1290_s0, %s1291_s23  }
  0x37   :  { %s1292_s26 = smov [#allocation8]   ;;  %s1257_s10 = scalar_lea.hbm %s1434_s5, 2048 }
  0x38   :  { %s62_s28 = sshll.u32 %s1292_s26, 4  ;;  %p1258_p10 = scmp.ne.s32.totalorder %s1434_s5, %s1257_s10  ;;  %s63_s28 = int_to_ptr.vmem [resolvable:$true] %s62_s28 }
  0x39   :  { %p1261_p11 = scmp.lt.u32.totalorder %s1257_s10, %s1434_s5 }
  0x3b   :  { %p1263_p12 = pnand %p1261_p11, %p1258_p10 }
  0x3d   :  { %1266 = shalt.err (!%p1263_p12)
}
  0x3e   :  { %s1267_s12 = scalar_lea.vmem %s63_s28, 2048  ;;  %p1272_p0 = scmp.lt.s32.totalorder %s63_s28, %s63_s28 }
  0x3f   :  { %p1268_p13 = scmp.ne.s32.totalorder %s63_s28, %s1267_s12  ;;  %p1273_p1 = scmp.lt.s32.totalorder %s1267_s12, %s1267_s12 }
  0x41   :  { %p1274_p2 = por %p1273_p1, %p1272_p0 }
  0x43   :  { %p1275_p3 = pnand %p1274_p2, %p1268_p13 }
  0x45   :  { %1278 = shalt.err (!%p1275_p3)
}
  0x46   :  { %s1293_s3 = smov 64   ;;  %s1294_s27 = smov 4  }
  0x47   :  { %68 = dma.hbm_to_vmem [thread:$0]  %s1434_s5, 2048, %s63_s28, [#allocation9], %s1293_s3, %s1293_s3, %s1294_s27  }
  0x48   :  { %1279 = dma.done.wait [#allocation4], 128  }
  0x49   :  { %1280 = vsyncadd [#allocation4], 4294967168 }
  0x4a   :  { %1281 = dma.done.wait [#allocation6], 9216  }
  0x4b   :  { %1282 = vsyncadd [#allocation6], 4294958080 }
  0x4c   :  { %1283 = dma.done.wait [#allocation9], 2048  }
  0x4d   :  { %1284 = vsyncadd [#allocation9], 4294965248  ;;  %v1295_v1 = vmov 0   ;;  %v1067_v2 = vld [vmem:[#allocation5 + $0x4] ss:$16 sps:$4 sm:$0xff]   ;;  %v88_v6 = vld [vmem:[#allocation3] sm:$0xff] }
  0x4e   :  { %196 = vmatprep.mubr.bf16.mxu0 %v1295_v1  ;;  %v1069_v3 = vld [vmem:[#allocation5] ss:$16 sps:$4 sm:$0xff]   ;;  %164 = vmatprep.subr.bf16.mxu0 %v1067_v2  ;;  %v1070_v4 = vld [vmem:[#allocation5 + $0x24] ss:$16 sps:$4 sm:$0xff]   ;;  %v1075_v7 = vld [vmem:[#allocation5 + $0xc] ss:$16 sps:$4 sm:$0xff]   ;;  %v89_v9 = vpack.c.bf16 %v88_v6, %v88_v6 }
  0x4f   :  { %v1072_v5 = vld [vmem:[#allocation5 + $0x20] ss:$16 sps:$4 sm:$0xff]   ;;  %165 = vmatpush1.bf16.msra.mxu0 %v1069_v3  ;;  %v1073_v8 = vld [vmem:[#allocation5 + $0x8] ss:$16 sps:$4 sm:$0xff]   ;;  %v1079_v10 = vld [vmem:[#allocation7 + $0x4] ss:$8 sps:$4 sm:$0xff]  }
  0x50   :  { %166 = vmatprep.subr.bf16.mxu0 %v1070_v4  ;;  %v1081_v11 = vld [vmem:[#allocation7] ss:$8 sps:$4 sm:$0xff]   ;;  %vm160_vm0 = vcmask 261120   ;;  %v1082_v12 = vld [vmem:[#allocation7 + $0x14] ss:$8 sps:$4 sm:$0xff]   ;;  %650 = vmatprep.subr.bf16.mxu1 %v1079_v10  ;;  %vm929_vm1 = vcmask 7168  }
  0x51   :  { %v1078_v13 = vld [vmem:[#allocation5 + $0x2c] ss:$16 sps:$4 sm:$0xff]   ;;  %651 = vmatpush1.bf16.msra.mxu1 %v1081_v11  ;;  %v1084_v14 = vld [vmem:[#allocation7 + $0x10] ss:$8 sps:$4 sm:$0xff]   ;;  %v1090_v18 = vld [vmem:[#allocation7 + $0x20] ss:$8 sps:$4 sm:$0xff]  }
  0x52   :  { %652 = vmatprep.subr.bf16.mxu1 %v1082_v12  ;;  %v1085_v15 = vld [vmem:[#allocation7 + $0x24] ss:$8 sps:$4 sm:$0xff]   ;;  %v1076_v16 = vld [vmem:[#allocation5 + $0x28] ss:$16 sps:$4 sm:$0xff]   ;;  %v1091_v19 = vld [vmem:[#allocation7 + $0x34] ss:$8 sps:$4 sm:$0xff]  }
  0x53   :  { %167 = vmatpush1.bf16.msra.mxu0 %v1072_v5  ;;  %v1089_v17 = vld [vmem:[#allocation7 + $0x104] ss:$8 sps:$4 sm:$0xff]   ;;  %v1087_v20 = vld [vmem:[#allocation7 + $0x100] ss:$8 sps:$4 sm:$0xff]   ;;  %v1095_v21 = vld [vmem:[#allocation7 + $0x114] ss:$8 sps:$4 sm:$0xff]  }
  0x54   :  { %205 = vmatprep.subr.bf16.mxu0 %v1075_v7  ;;  %v1096_v22 = vld [vmem:[#allocation7 + $0x30] ss:$8 sps:$4 sm:$0xff]   ;;  %v1097_v23 = vld [vmem:[#allocation7 + $0x44] ss:$8 sps:$4 sm:$0xff]   ;;  %v1102_v26 = vld [vmem:[#allocation7 + $0x40] ss:$8 sps:$4 sm:$0xff]  }
  0x55   :  { %653 = vmatpush1.bf16.msra.mxu1 %v1084_v14  ;;  %v1093_v24 = vld [vmem:[#allocation7 + $0x110] ss:$8 sps:$4 sm:$0xff]   ;;  %v1101_v25 = vld [vmem:[#allocation7 + $0x124] ss:$8 sps:$4 sm:$0xff]   ;;  %v1103_v27 = vld [vmem:[#allocation7 + $0x54] ss:$8 sps:$4 sm:$0xff]  }
  0x56   :  { %946 = vmatmul.mubr.msk.bf16.vlgmr.msra.gmra.mrb[0].mxu0 %vm160_vm0, %v89_v9  ;;  %654 = vmatprep.subr.bf16.mxu1 %v1085_v15  ;;  %v1099_v28 = vld [vmem:[#allocation7 + $0x120] ss:$8 sps:$4 sm:$0xff]   ;;  %v1107_v29 = vld [vmem:[#allocation7 + $0x134] ss:$8 sps:$4 sm:$0xff]   ;;  %v1108_v30 = vld [vmem:[#allocation7 + $0x50] ss:$8 sps:$4 sm:$0xff]  }
  0x57   :  { %206 = vmatpush1.bf16.msra.mxu0 %v1073_v8  ;;  %237 = vmatprep.mubr.bf16.mxu0 %v1295_v1  ;;  %v1109_v31 = vld [vmem:[#allocation7 + $0x64] ss:$8 sps:$4 sm:$0xff]   ;;  %v1105_v32 = vld [vmem:[#allocation7 + $0x130] ss:$8 sps:$4 sm:$0xff]   ;;  %v1114_v34 = vld [vmem:[#allocation7 + $0x60] ss:$8 sps:$4 sm:$0xff]  }
  0x58   :  { %207 = vmatprep.subr.bf16.mxu0 %v1078_v13  ;;  %v1113_v33 = vld [vmem:[#allocation7 + $0x144] ss:$8 sps:$4 sm:$0xff]   ;;  %v1115_v35 = vld [vmem:[#allocation7 + $0x74] ss:$8 sps:$4 sm:$0xff]   ;;  %v1111_v36 = vld [vmem:[#allocation7 + $0x140] ss:$8 sps:$4 sm:$0xff]   ;;  %v100_v13 = vlaneseq }
  0x59   :  { %655 = vmatpush1.bf16.msra.mxu1 %v1090_v18  ;;  %v1119_v37 = vld [vmem:[#allocation7 + $0x154] ss:$8 sps:$4 sm:$0xff]   ;;  %v1120_v38 = vld [vmem:[#allocation7 + $0x70] ss:$8 sps:$4 sm:$0xff]   ;;  %v1121_v39 = vld [vmem:[#allocation7 + $0x84] ss:$8 sps:$4 sm:$0xff]  }
  0x5a   :  { %656 = vmatprep.subr.bf16.mxu1 %v1091_v19  ;;  %v1117_v40 = vld [vmem:[#allocation7 + $0x150] ss:$8 sps:$4 sm:$0xff]   ;;  %v1125_v41 = vld [vmem:[#allocation7 + $0x164] ss:$8 sps:$4 sm:$0xff]   ;;  %v1126_v42 = vld [vmem:[#allocation7 + $0x80] ss:$8 sps:$4 sm:$0xff]  }
  0x5b   :  { %208 = vmatpush1.bf16.msra.mxu0 %v1076_v16  ;;  %v1127_v43 = vld [vmem:[#allocation7 + $0x94] ss:$8 sps:$4 sm:$0xff]   ;;  %v1123_v44 = vld [vmem:[#allocation7 + $0x160] ss:$8 sps:$4 sm:$0xff]   ;;  %v1132_v46 = vld [vmem:[#allocation7 + $0x90] ss:$8 sps:$4 sm:$0xff]  }
  0x5c   :  { %691 = vmatprep.subr.bf16.mxu0 %v1089_v17  ;;  %v1131_v45 = vld [vmem:[#allocation7 + $0x174] ss:$8 sps:$4 sm:$0xff]   ;;  %v1133_v47 = vld [vmem:[#allocation7 + $0xa4] ss:$8 sps:$4 sm:$0xff]   ;;  %v1129_v48 = vld [vmem:[#allocation7 + $0x170] ss:$8 sps:$4 sm:$0xff]  }
  0x5d   :  { %657 = vmatpush1.bf16.msra.mxu1 %v1096_v22  ;;  %v1137_v49 = vld [vmem:[#allocation7 + $0x184] ss:$8 sps:$4 sm:$0xff]   ;;  %v1138_v50 = vld [vmem:[#allocation7 + $0xa0] ss:$8 sps:$4 sm:$0xff]   ;;  %v1139_v51 = vld [vmem:[#allocation7 + $0xb4] ss:$8 sps:$4 sm:$0xff]  }
  0x5e   :  { %947 = vmatmul.mubr.msk.bf16.vlgmr.msra.gmra.mrb[4].mxu0 %vm160_vm0, %v89_v9  ;;  %658 = vmatprep.subr.bf16.mxu1 %v1097_v23  ;;  %v1135_v52 = vld [vmem:[#allocation7 + $0x180] ss:$8 sps:$4 sm:$0xff]   ;;  %v1143_v53 = vld [vmem:[#allocation7 + $0x194] ss:$8 sps:$4 sm:$0xff]   ;;  %v1144_v54 = vld [vmem:[#allocation7 + $0xb0] ss:$8 sps:$4 sm:$0xff]  }
  0x5f   :  { %692 = vmatpush1.bf16.msra.mxu0 %v1087_v20  ;;  %v1145_v55 = vld [vmem:[#allocation7 + $0xc4] ss:$8 sps:$4 sm:$0xff]   ;;  %v1141_v56 = vld [vmem:[#allocation7 + $0x190] ss:$8 sps:$4 sm:$0xff]   ;;  %v1150_v58 = vld [vmem:[#allocation7 + $0xc0] ss:$8 sps:$4 sm:$0xff]  }
  0x60   :  { %693 = vmatprep.subr.bf16.mxu0 %v1095_v21  ;;  %v1149_v57 = vld [vmem:[#allocation7 + $0x1a4] ss:$8 sps:$4 sm:$0xff]   ;;  %v1151_v59 = vld [vmem:[#allocation7 + $0xd4] ss:$8 sps:$4 sm:$0xff]   ;;  %v1147_v60 = vld [vmem:[#allocation7 + $0x1a0] ss:$8 sps:$4 sm:$0xff]  }
  0x61   :  { %659 = vmatpush1.bf16.msra.mxu1 %v1102_v26  ;;  %v1155_v61 = vld [vmem:[#allocation7 + $0x1b4] ss:$8 sps:$4 sm:$0xff]   ;;  %v1156_v62 = vld [vmem:[#allocation7 + $0xd0] ss:$8 sps:$4 sm:$0xff]   ;;  %v1157_v0 = vld [vmem:[#allocation7 + $0xe4] ss:$8 sps:$4 sm:$0xff]  }
  0x62   :  { %660 = vmatprep.subr.bf16.mxu1 %v1103_v27  ;;  %v1153_v63 = vld [vmem:[#allocation7 + $0x1b0] ss:$8 sps:$4 sm:$0xff]   ;;  %v1161_v1 = vld [vmem:[#allocation7 + $0x1c4] ss:$8 sps:$4 sm:$0xff]   ;;  %v1159_v2 = vld [vmem:[#allocation7 + $0x1c0] ss:$8 sps:$4 sm:$0xff]  }
  0x63   :  { %694 = vmatpush1.bf16.msra.mxu0 %v1093_v24  ;;  %v1162_v3 = vld [vmem:[#allocation7 + $0xe0] ss:$8 sps:$4 sm:$0xff]   ;;  %v1163_v4 = vld [vmem:[#allocation7 + $0xf4] ss:$8 sps:$4 sm:$0xff]   ;;  %v1165_v6 = vld [vmem:[#allocation7 + $0x1d0] ss:$8 sps:$4 sm:$0xff]  }
  0x64   :  { %695 = vmatprep.subr.bf16.mxu0 %v1101_v25  ;;  %v1167_v5 = vld [vmem:[#allocation7 + $0x1d4] ss:$8 sps:$4 sm:$0xff]   ;;  %v1168_v7 = vld [vmem:[#allocation7 + $0xf0] ss:$8 sps:$4 sm:$0xff]   ;;  %v1171_v8 = vld [vmem:[#allocation7 + $0x1e4] ss:$8 sps:$4 sm:$0xff]  }
  0x65   :  { %661 = vmatpush1.bf16.msra.mxu1 %v1108_v30  ;;  %v1169_v9 = vld [vmem:[#allocation7 + $0x1e0] ss:$8 sps:$4 sm:$0xff]   ;;  %v1174_v10 = vld [vmem:[#allocation7 + $0x1f4] ss:$8 sps:$4 sm:$0xff]   ;;  %v1172_v11 = vld [vmem:[#allocation7 + $0x1f0] ss:$8 sps:$4 sm:$0xff]  }
  0x66   :  { %662 = vmatprep.subr.bf16.mxu1 %v1109_v31  ;;  %v1175_v12 = vld [vmem:[#allocation8 + $0x40] sm:$0xff]   ;;  %v1399_v14 = vshrl.u32 %v100_v13, 7  ;;  %v98_v16 = vld [vmem:[%s1431_s2] sm:$0xf] }
  0x67   :  { %696 = vmatpush1.bf16.msra.mxu0 %v1099_v28 }
  0x68   :  { %697 = vmatprep.subr.bf16.mxu0 %v1107_v29  ;;  %v1402_v15 = vsub.s32 0, %v1399_v14  ;;  %v106_v17 = vsub.s32 1, %v1399_v14  ;;  %v110_v23 = vsub.s32 2, %v1399_v14  ;;  %v114_v26 = vsub.s32 3, %v1399_v14 }
  0x69   :  { %663 = vmatpush1.bf16.msra.mxu1 %v1114_v34 }
  0x6a   :  { %664 = vmatprep.subr.bf16.mxu1 %v1115_v35  ;;  %v103_v18 = vrot.slane %v98_v16, %v1402_v15  ;;  %v107_v19 = vrot.slane %v98_v16, %v106_v17  ;;  %v111_v30 = vrot.slane %v98_v16, %v110_v23  ;;  %v1177_v35 = vld [vmem:[#allocation8 + $0x48] sm:$0xff]  }
  0x6b   :  { %698 = vmatpush1.bf16.msra.mxu0 %v1105_v32  ;;  %v115_v32 = vrot.slane %v98_v16, %v114_v26  ;;  %v912_v16 = vld [vmem:[%s1436_s7] sm:$0x1] }
  0x6c   :  { %699 = vmatprep.subr.bf16.mxu0 %v1113_v33  ;;  %v1176_v33 = vld [vmem:[#allocation8] sm:$0xff]  }
  0x6d   :  { %665 = vmatpush1.bf16.msra.mxu1 %v1120_v38 }
  0x6e   :  { %666 = vmatprep.subr.bf16.mxu1 %v1121_v39 }
  0x6f   :  { %700 = vmatpush1.bf16.msra.mxu0 %v1111_v36 }
  0x70   :  { %701 = vmatprep.subr.bf16.mxu0 %v1119_v37 }
  0x71   :  { %667 = vmatpush1.bf16.msra.mxu1 %v1126_v42 }
  0x72   :  { %668 = vmatprep.subr.bf16.mxu1 %v1127_v43 }
  0x73   :  { %702 = vmatpush1.bf16.msra.mxu0 %v1117_v40 }
  0x74   :  { %703 = vmatprep.subr.bf16.mxu0 %v1125_v41  ;;  %v1178_v41 = vld [vmem:[#allocation8 + $0x8] sm:$0xff]  }
  0x75   :  { %669 = vmatpush1.bf16.msra.mxu1 %v1132_v46 }
  0x76   :  { %670 = vmatprep.subr.bf16.mxu1 %v1133_v47  ;;  %v1180_v47 = vld [vmem:[#allocation8 + $0x10] sm:$0xff]  }
  0x77   :  { %704 = vmatpush1.bf16.msra.mxu0 %v1123_v44  ;;  %v1179_v44 = vld [vmem:[#allocation8 + $0x50] sm:$0xff]  }
  0x78   :  { %705 = vmatprep.subr.bf16.mxu0 %v1131_v45 }
  0x79   :  { %671 = vmatpush1.bf16.msra.mxu1 %v1138_v50  ;;  %v1182_v50 = vld [vmem:[#allocation8 + $0x18] sm:$0xff]  }
  0x7a   :  { %672 = vmatprep.subr.bf16.mxu1 %v1139_v51  ;;  %v1183_v51 = vld [vmem:[#allocation8 + $0x60] sm:$0xff]  }
  0x7b   :  { %706 = vmatpush1.bf16.msra.mxu0 %v1129_v48 }
  0x7c   :  { %707 = vmatprep.subr.bf16.mxu0 %v1137_v49  ;;  %v1181_v49 = vld [vmem:[#allocation8 + $0x58] sm:$0xff]  }
  0x7d   :  { %673 = vmatpush1.bf16.msra.mxu1 %v1144_v54  ;;  %v1186_v54 = vld [vmem:[#allocation8 + $0x28] sm:$0xff]  }
  0x7e   :  { %674 = vmatprep.subr.bf16.mxu1 %v1145_v55  ;;  %v1187_v55 = vld [vmem:[#allocation8 + $0x70] sm:$0xff]  }
  0x7f   :  { %708 = vmatpush1.bf16.msra.mxu0 %v1135_v52  ;;  %v1184_v52 = vld [vmem:[#allocation8 + $0x20] sm:$0xff]  }
  0x80   :  { %709 = vmatprep.subr.bf16.mxu0 %v1143_v53  ;;  %v1185_v53 = vld [vmem:[#allocation8 + $0x68] sm:$0xff]  }
  0x81   :  { %675 = vmatpush1.bf16.msra.mxu1 %v1150_v58  ;;  %v1190_v58 = vld [vmem:[#allocation8 + $0x38] sm:$0xff]  }
  0x82   :  { %676 = vmatprep.subr.bf16.mxu1 %v1151_v59  ;;  %v318_v59 = vld [vmem:[%s1433_s4] sm:$0x3] }
  0x83   :  { %710 = vmatpush1.bf16.msra.mxu0 %v1141_v56  ;;  %v1188_v56 = vld [vmem:[#allocation8 + $0x30] sm:$0xff]  }
  0x84   :  { %711 = vmatprep.subr.bf16.mxu0 %v1149_v57  ;;  %v1189_v57 = vld [vmem:[#allocation8 + $0x78] sm:$0xff]  }
  0x85   :  { %677 = vmatpush1.bf16.msra.mxu1 %v1156_v62 }
  0x86   :  { %678 = vmatprep.subr.bf16.mxu1 %v1157_v0 }
  0x87   :  { %712 = vmatpush1.bf16.msra.mxu0 %v1147_v60 }
  0x88   :  { %713 = vmatprep.subr.bf16.mxu0 %v1155_v61 }
  0x89   :  { %679 = vmatpush1.bf16.msra.mxu1 %v1162_v3 }
  0x8a   :  { %680 = vmatprep.subr.bf16.mxu1 %v1163_v4 }
  0x8b   :  { %714 = vmatpush1.bf16.msra.mxu0 %v1153_v63  ;;  %v323_v63 = vrot.slane %v318_v59, %v1402_v15 }
  0x8c   :  { %715 = vmatprep.subr.bf16.mxu0 %v1161_v1  ;;  %v327_v1 = vrot.slane %v318_v59, %v106_v17  ;;  %v913_v17 = vunpack.c.l.bf16 %v912_v16 }
  0x8d   :  { %681 = vmatpush1.bf16.msra.mxu1 %v1168_v7 }
  0x8e   :  { %1030 = vmatprep.subr.bf16.mxu1 %v1175_v12 }
  0x8f   :  { %716 = vmatpush1.bf16.msra.mxu0 %v1159_v2 }
  0x90   :  { %717 = vmatprep.subr.bf16.mxu0 %v1167_v5 }
  0x93   :  { %718 = vmatpush1.bf16.msra.mxu0 %v1165_v6 }
  0x94   :  { %719 = vmatprep.subr.bf16.mxu0 %v1171_v8 }
  0x97   :  { %720 = vmatpush1.bf16.msra.mxu0 %v1169_v9 }
  0x98   :  { %721 = vmatprep.subr.bf16.mxu0 %v1174_v10 }
  0x9b   :  { %722 = vmatpush1.bf16.msra.mxu0 %v1172_v11 }
 0x129   :  { %v198_v20 = vpop.f32.mrb[0].mxu0 }
 0x12a   :  { %v199_v21 = vadd.f32 %v198_v20, %v103_v18  ;;  %v200_v22 = vpop.f32.mrb[1].mxu0 }
 0x12b   :  { %v201_v24 = vadd.f32 %v200_v22, %v107_v19  ;;  %v202_v25 = vpop.f32.mrb[2].mxu0  ;;  %v1012_v19 = vld [vmem:[%s1435_s6] ss:$0 sm:$0xff] }
 0x12c   :  { %v246_v27 = vmax.f32 %v199_v21, 0.0  ;;  %v203_v28 = vpop.f32.mrb[3].mxu0 }
 0x12d   :  { %v247_v29 = vmax.f32 %v201_v24, 0.0  ;;  %v917_v24 = vrot.slane %v913_v17, %v1402_v15 }
 0x12e   :  { %v250_v34 = vpack.c.bf16 %v246_v27, %v246_v27  ;;  %v1029_v27 = vld [vmem:[#allocation2] ss:$0 sm:$0xff] }
 0x12f   :  { %v251_v31 = vpack.c.bf16 %v247_v29, %v247_v29 }
 0x131   :  { %v239_v36 = vpop.f32.mrb[4].mxu0  ;;  %682 = vmatprep.mubr.bf16.mxu1 %v251_v31 }
 0x132   :  { %v240_v37 = vadd.f32 %v239_v36, %v111_v30  ;;  %v241_v38 = vpop.f32.mrb[5].mxu0  ;;  %683 = vmatmul.mubr.bf16.vlgmr.msra.gmra.mrb[0].mxu1 %v250_v34 }
 0x133   :  { %v242_v39 = vadd.f32 %v241_v38, %v115_v32  ;;  %v243_v40 = vpop.f32.mrb[6].mxu0  ;;  %1031 = vmatpush3.bf16.msra.mxu1 %v1176_v33 }
 0x134   :  { %v248_v42 = vmax.f32 %v240_v37, 0.0  ;;  %v244_v43 = vpop.f32.mrb[7].mxu0  ;;  %1032 = vmatprep.subr.bf16.mxu1 %v1177_v35 }
 0x135   :  { %v249_v45 = vmax.f32 %v242_v39, 0.0 }
 0x136   :  { %v252_v48 = vpack.c.bf16 %v248_v42, %v248_v42 }
 0x137   :  { %v253_v46 = vpack.c.bf16 %v249_v45, %v249_v45  ;;  %1033 = vmatpush3.bf16.msra.mxu1 %v1178_v41 }
 0x138   :  { %1034 = vmatprep.subr.bf16.mxu1 %v1179_v44 }
 0x139   :  { %723 = vmatprep.mubr.bf16.mxu0 %v253_v46 }
 0x13a   :  { %724 = vmatmul.mubr.bf16.vlgmr.msra.gmra.mrb[8].mxu0 %v252_v48 }
 0x13b   :  { %1035 = vmatpush3.bf16.msra.mxu1 %v1180_v47 }
 0x13c   :  { %1036 = vmatprep.subr.bf16.mxu1 %v1181_v49 }
 0x13f   :  { %1037 = vmatpush3.bf16.msra.mxu1 %v1182_v50 }
 0x140   :  { %1038 = vmatprep.subr.bf16.mxu1 %v1183_v51 }
 0x143   :  { %1039 = vmatpush3.bf16.msra.mxu1 %v1184_v52 }
 0x144   :  { %1040 = vmatprep.subr.bf16.mxu1 %v1185_v53 }
 0x147   :  { %1041 = vmatpush3.bf16.msra.mxu1 %v1186_v54 }
 0x148   :  { %1042 = vmatprep.subr.bf16.mxu1 %v1187_v55 }
 0x14b   :  { %1043 = vmatpush3.bf16.msra.mxu1 %v1188_v56 }
 0x14c   :  { %1044 = vmatprep.subr.bf16.mxu1 %v1189_v57 }
 0x14f   :  { %1045 = vmatpush3.bf16.msra.mxu1 %v1190_v58 }
 0x205   :  { %v684_v60 = vpop.f32.mrb[0].mxu1 }
 0x206   :  { %v686_v61 = vpop.f32.mrb[1].mxu1  ;;  %v685_v2 = vadd.f32 %v684_v60, %v323_v63 }
 0x207   :  { %v688_v62 = vpop.f32.mrb[2].mxu1  ;;  %v687_v3 = vadd.f32 %v686_v61, %v327_v1 }
 0x208   :  { %v689_v0 = vpop.f32.mrb[3].mxu1 }
 0x20d   :  { %v725_v4 = vpop.f32.mrb[8].mxu0 }
 0x20e   :  { %v726_v5 = vadd.f32 %v725_v4, %v685_v2  ;;  %v727_v6 = vpop.f32.mrb[9].mxu0 }
 0x20f   :  { %v728_v7 = vadd.f32 %v727_v6, %v687_v3  ;;  %v729_v8 = vpop.f32.mrb[10].mxu0 }
 0x210   :  { %v732_v9 = vmax.f32 %v726_v5, 0.0  ;;  %v730_v10 = vpop.f32.mrb[11].mxu0 }
 0x211   :  { %v733_v11 = vmax.f32 %v728_v7, 0.0 }
 0x212   :  { %v734_v13 = vpack.c.bf16 %v732_v9, %v732_v9 }
 0x213   :  { %v735_v12 = vpack.c.bf16 %v733_v11, %v733_v11 }
 0x215   :  { %903 = vmatprep.mubr.bf16.mxu1 %v735_v12 }
 0x216   :  { %904 = vmatmul.mubr.bf16.vlgmr.msra.gmra.mrb[4].mxu1 %v734_v13 }
 0x2e9   :  { %v1046_v14 = vpop.f32.mrb[4].mxu1 }
 0x2ea   :  { %v1047_v18 = vpop.f32.mrb[5].mxu1 }
 0x2eb   :  { %v1048_v20 = vadd.f32 %v1047_v18, %v1046_v14  ;;  %v1049_v21 = vpop.f32.mrb[6].mxu1 }
 0x2ec   :  { %v1050_v22 = vpop.f32.mrb[7].mxu1 }
 0x2ed   :  { %v906_v23 = vadd.f32 %v1048_v20, %v1012_v19 }
 0x2ef   :  { %v911_v25 = vmax.f32 %v906_v23, 0.0 }
 0x2f1   :  { %v918_v26 = vmul.f32 %v917_v24, %v911_v25 }
 0x2f3   :  { %919 = vadd.xlane.f32.xlu0 %v918_v26 }
 0x380   :  { %v920_v28 = vpop.xlane.xlu0 %919 }
 0x381   :  { %v928_v29 = vadd.f32 %v1029_v27, %v920_v28 }
 0x383   :  { %930 = vst.msk [vmem:[%s1438_s9] sm:$0xff] %vm929_vm1, %v928_v29 }
 0x384   :  { %935 = vsyncpa [#allocation4], 1 }
 0x385   :  { %936 = vsyncpa [#allocation6], 1 }
 0x386   :  { %937 = vsyncpa [#allocation9], 1 }

</bundles_post_ra>
